<compile_context>
chip_gen: v6e
topology: v6e:2x2x1
jax: 0.10.0
libtpu: 0.0.40
codegen_flags: <defaults>
</compile_context>

<pallas_src>
import math

import jax
import jax.numpy as jnp
from jax import lax
from jax.experimental import pallas as pl
from jax.experimental.pallas import tpu as pltpu


def _round_up(n, m):
    return (n + m - 1) // m * m


def _cdiv(a, b):
    return -(-a // b)


def _pick_tile_rows(n_rows, row_bytes, *, max_rows=8192, tile_budget_bytes=8 << 20):
    """Rows per grid step: as large as the VMEM budget allows, but never a
    single giant tile when there is enough work to keep 2 TCs busy (v7x)."""
    cap = max(8, (tile_budget_bytes // max(row_bytes, 1)) // 8 * 8)
    t = min(_round_up(max(n_rows, 1), 8), max_rows, cap)
    if n_rows > 8 and _cdiv(n_rows, t) < 2:
        t = max(8, _round_up(_cdiv(n_rows, 2), 8))
    return t


# ---------------------------------------------------------------------------
# Kernel
# ---------------------------------------------------------------------------

def _emb_kernel(x_ref, freq_ref, phase_ref, o_ref):
    """o = sin(expand(x) * freq + phase): one EUP transcendental per lane.

    x_ref:     (TBR, K)  K folded timesteps per output row (K may be 1)
    freq_ref:  (K, W)    resident block-diagonal freq table (W % 128 == 0)
    phase_ref: (1, W)    resident phase row: 0 on sin lanes, pi/2 on cos lanes
    o_ref:     (TBR, W)  lane-dense output tile (single unmasked store)
    """
    if x_ref.shape[-1] == 1:
        # Wide path: plain VPU broadcast multiply (no K=1 MXU matmul).
        arg = x_ref[...] * freq_ref[...]
    else:
        # Folded path: one tiny MXU matmul replaces k lane-broadcasts + concat.
        arg = jnp.dot(x_ref[...], freq_ref[...],
                      precision=lax.Precision.HIGHEST,
                      preferred_element_type=jnp.float32)
    arg = arg + phase_ref[...]                        # VPU add (free slack slots)
    o_ref[...] = jnp.sin(arg).astype(o_ref.dtype)     # single sin per element


# ---------------------------------------------------------------------------
# Wrapper
# ---------------------------------------------------------------------------

def _launch(x, freq_tbl, phase_tbl, k_fold, out_dtype):
    """x: (B,) f32 timesteps -> (rows_pad, W) padded embedding rows."""
    b = x.shape[0]
    kp, w = freq_tbl.shape
    rows = _cdiv(b, k_fold)
    tile_rows = _pick_tile_rows(rows, w * jnp.dtype(out_dtype).itemsize)
    rows_pad = _round_up(rows, tile_rows)
    b_pad = rows_pad * k_fold
    if b_pad != b:
        x = jnp.pad(x, (0, b_pad - b))                # padded rows dropped later
    xk = x.reshape(rows_pad, k_fold)
    if kp != k_fold:                                  # pad K to a sublane multiple
        xk = jnp.pad(xk, ((0, 0), (0, kp - k_fold)))

    return pl.pallas_call(
        _emb_kernel,
        out_shape=jax.ShapeDtypeStruct((rows_pad, w), out_dtype),
        grid=(rows_pad // tile_rows,),
        in_specs=[
            pl.BlockSpec((tile_rows, kp), lambda i: (i, 0)),
            pl.BlockSpec((kp, w), lambda i: (0, 0)),   # resident freq table
            pl.BlockSpec((1, w), lambda i: (0, 0)),    # resident phase row
        ],
        out_specs=pl.BlockSpec((tile_rows, w), lambda i: (i, 0)),
        compiler_params=pltpu.CompilerParams(
            dimension_semantics=("parallel",),
            vmem_limit_bytes=32 << 20),
    )(xk, freq_tbl, phase_tbl)


def sinusoidal_pos_emb(x, dim, out_dtype=jnp.float32):
    """x: float timesteps of any shape -> x.shape + (dim,) embedding.

    Pass out_dtype=jnp.bfloat16 when the consumer accepts it: at production
    batch sizes the cost is the HBM writeback of the (B, dim) output and bf16
    halves it (internal arg / sin stay f32).
    """
    assert dim % 2 == 0 and dim >= 4, "dim must be even and >= 4"
    half = dim // 2
    lead_shape = x.shape
    xf = jnp.asarray(x).reshape(-1).astype(jnp.float32)
    b = xf.shape[0]

    # Tables built ONCE in the wrapper (never recomputed per grid step).
    scale = math.log(10000.0) / (half - 1)
    freqs = jnp.exp(jnp.arange(half, dtype=jnp.float32) * -scale)         # (half,)
    f2 = jnp.concatenate([freqs, freqs])                                  # (dim,)
    phase_dim = jnp.concatenate(
        [jnp.zeros((half,), jnp.float32),
         jnp.full((half,), math.pi / 2, jnp.float32)])                    # (dim,)

    if dim < 128 and 128 % dim == 0:
        # Narrow dim: fold k timesteps per row -> lane-dense (rows, 128) tiles.
        k = 128 // dim
        kp = _round_up(k, 8)                           # sublane-aligned matmul K
        w_tbl = (jnp.eye(k, dtype=jnp.float32)[:, :, None] * f2).reshape(k, k * dim)
        w_tbl = jnp.pad(w_tbl, ((0, kp - k), (0, 0)))                     # (kp, 128)
        phase = jnp.tile(phase_dim, k).reshape(1, k * dim)                # (1, 128)
        out = _launch(xf, w_tbl, phase, k, out_dtype)                     # (rows_pad, 128)
        out = out.reshape(-1, dim)[:b]                 # free row-major view, drop pad
    else:
        # Wide / irregular dim: pad lanes to a multiple of 128 so stores stay
        # unmasked; pad lanes get freq = phase = 0 (sin(0) = 0), sliced away.
        dim_pad = _round_up(dim, 128)
        f_row = jnp.zeros((dim_pad,), jnp.float32).at[:dim].set(f2).reshape(1, dim_pad)
        p_row = jnp.zeros((dim_pad,), jnp.float32).at[:dim].set(phase_dim).reshape(1, dim_pad)
        out = _launch(xf, f_row, p_row, 1, out_dtype)                     # (b_pad, dim_pad)
        out = out[:b, :dim]

    return out.reshape(*lead_shape, dim)


# ---------------------------------------------------------------------------
# Reference + test
# ---------------------------------------------------------------------------

def _reference(x, dim):
    half = dim // 2
    emb = math.log(10000.0) / (half - 1)
    emb = jnp.exp(jnp.arange(half, dtype=jnp.float32) * -emb)
    emb = x.astype(jnp.float32)[..., None] * emb[None, :]
    return jnp.concatenate([jnp.sin(emb), jnp.cos(emb)], axis=-1)


if __name__ == "__main__":
    key = jax.random.PRNGKey(0)
    B, DIM = 8, 32
    # Timesteps like a diffusion model would pass in.
    x = jax.random.uniform(key, (B,), jnp.float32, 0.0, 1000.0)

    out = jax.block_until_ready(sinusoidal_pos_emb(x, DIM))
    assert out.shape == (B, DIM)
    # sin(a + pi/2) == cos(a) is exact in math; in f32 the phase add costs at
    # most ~ulp(|arg|)/2 of argument (~6e-5 at |arg|~1e3), the same order as
    # f32 range reduction itself, so compare with a matching error budget.
    assert jnp.allclose(out, _reference(x, DIM), atol=2e-3, rtol=1e-3)

    # Tight checks (moderate |arg|) across every code path:
    #   (13, 32): folded MXU path + row padding
    #   (16, 256): wide lane-aligned path (k = 1)
    #   (9, 192) / (13, 40): irregular dims -> zero-padded lanes, sliced back
    for b2, d2 in ((13, 32), (16, 256), (9, 192), (13, 40)):
        x2 = jax.random.uniform(jax.random.PRNGKey(1), (b2,), jnp.float32, 0.0, 10.0)
        o2 = jax.block_until_ready(sinusoidal_pos_emb(x2, d2))
        assert o2.shape == (b2, d2)
        assert jnp.allclose(o2, _reference(x2, d2), atol=1e-4, rtol=1e-4), (b2, d2)

    print("KERNEL_OK")
</pallas_src>

<mosaic_0001>
module attributes {stable_mosaic.version = 11 : i64} {
  func.func @_emb_kernel(%arg0: i32, %arg1: memref<8x8xf32, #tpu.memory_space<vmem>>, %arg2: memref<8x128xf32, #tpu.memory_space<vmem>>, %arg3: memref<1x128xf32, #tpu.memory_space<vmem>>, %arg4: memref<8x128xf32, #tpu.memory_space<vmem>>) attributes {dimension_semantics = [#tpu.dimension_semantics<parallel>], iteration_bounds = array<i64: 1>, scalar_prefetch = 0 : i64, scratch_operands = 0 : i64, tpu.core_type = #tpu.core_type<tc>, window_params = [{transform_indices = @transform_0, window_bounds = array<i64: 8, 8>}, {pipeline_mode = #tpu.pipeline_mode<synchronous>, transform_indices = @transform_1, window_bounds = array<i64: 8, 128>}, {pipeline_mode = #tpu.pipeline_mode<synchronous>, transform_indices = @transform_2, window_bounds = array<i64: 1, 128>}, {transform_indices = @transform_3, window_bounds = array<i64: 8, 128>}]} {
    %c0 = arith.constant 0 : index
    %c0_0 = arith.constant 0 : index
    %0 = vector.load %arg1[%c0, %c0_0] : memref<8x8xf32, #tpu.memory_space<vmem>>, vector<8x8xf32>
    %c0_1 = arith.constant 0 : index
    %c0_2 = arith.constant 0 : index
    %1 = vector.load %arg2[%c0_1, %c0_2] : memref<8x128xf32, #tpu.memory_space<vmem>>, vector<8x128xf32>
    %cst = arith.constant dense<0.000000e+00> : vector<8x128xf32>
    %2 = tpu.matmul %0, %1, %cst {dimension_numbers = #tpu.dot_dimension_numbers<[1], [0], [0], [1], [0, 0, 1, 1], [], []>, precision = #tpu.contract_precision<fp32>} : vector<8x8xf32>, vector<8x128xf32>, vector<8x128xf32> -> vector<8x128xf32>
    %c0_3 = arith.constant 0 : index
    %c0_4 = arith.constant 0 : index
    %3 = vector.load %arg3[%c0_3, %c0_4] : memref<1x128xf32, #tpu.memory_space<vmem>>, vector<1x128xf32>
    %4 = vector.broadcast %3 : vector<1x128xf32> to vector<8x128xf32>
    %5 = arith.addf %2, %4 : vector<8x128xf32>
    %6 = math.sin %5 : vector<8x128xf32>
    %c0_5 = arith.constant 0 : index
    %c0_6 = arith.constant 0 : index
    %7 = vector.load %arg4[%c0_5, %c0_6] : memref<8x128xf32, #tpu.memory_space<vmem>>, vector<8x128xf32>
    tpu.vector_store %arg4[%c0_5, %c0_6], %6 {strides = array<i32>} : memref<8x128xf32, #tpu.memory_space<vmem>>, vector<8x128xf32>,
    return
  }
  func.func @transform_0(%arg0: i32) -> (i32, i32) {
    %c0_i32 = arith.constant 0 : i32
    %c0_i32_0 = arith.constant 0 : i32
    return %arg0, %c0_i32 : i32, i32
  }
  func.func @transform_1(%arg0: i32) -> (i32, i32) {
    %c0_i32 = arith.constant 0 : i32
    %c0_i32_0 = arith.constant 0 : i32
    %c0_i32_1 = arith.constant 0 : i32
    return %c0_i32, %c0_i32_0 : i32, i32
  }
  func.func @transform_2(%arg0: i32) -> (i32, i32) {
    %c0_i32 = arith.constant 0 : i32
    %c0_i32_0 = arith.constant 0 : i32
    %c0_i32_1 = arith.constant 0 : i32
    return %c0_i32, %c0_i32_0 : i32, i32
  }
  func.func @transform_3(%arg0: i32) -> (i32, i32) {
    %c0_i32 = arith.constant 0 : i32
    %c0_i32_0 = arith.constant 0 : i32
    return %arg0, %c0_i32 : i32, i32
  }
}

</mosaic_0001>

<bundles_post_ra>
// kernel: tpu_custom_call.1
= control target key start
LH: loop header
LB: loop body
LE: loop exit
PB: predicated region body
PF: predicated region fallthrough
CT: control target
= control target key end

     0   :  { %8 = vsyncpa [#allocation3], 0  ;;  %s821_s0 = inlined_call_operand.hbm [shape: f32[8,8], index: 0, kind: input, shape index: {}]   ;;  %s822_s1 = inlined_call_operand.hbm [shape: f32[8,128], index: 1, kind: input, shape index: {}]   ;;  %s823_s2 = inlined_call_operand.vmem [shape: f32[1,128], index: 2, kind: input, shape index: {}]   ;;  %s824_s3 = inlined_call_operand.hbm [shape: f32[8,128], index: 3, kind: output, shape index: {}]  }
   0x1   :  { %9 = vsyncpa [#allocation6], 0 }
   0x2   :  { %10 = vsyncpa [#allocation4], 0  ;;  %s751_s12 = smov [#allocation2]   ;;  %s752_s14 = smov [#allocation5]  }
   0x3   :  { %s17_s13 = sshll.u32 %s751_s12, 4  ;;  %s27_s15 = sshll.u32 %s752_s14, 4  ;;  %s18_s13 = int_to_ptr.vmem [resolvable:$true] %s17_s13  ;;  %s28_s15 = int_to_ptr.vmem [resolvable:$true] %s27_s15 }
   0x4   :  { %s693_s16 = scalar_lea.vmem %s18_s13, 128  ;;  %p698_p1 = scmp.lt.s32.totalorder %s18_s13, %s18_s13 }
   0x5   :  { %p694_p0 = scmp.ne.s32.totalorder %s18_s13, %s693_s16  ;;  %p699_p2 = scmp.lt.s32.totalorder %s693_s16, %s693_s16 }
   0x7   :  { %p700_p3 = por %p699_p2, %p698_p1 }
   0x9   :  { %p701_p4 = pnand %p700_p3, %p694_p0 }
   0xb   :  { %704 = shalt.err (!%p701_p4)
}
   0xc   :  { %20 = dma.hbm_to_vmem [thread:$0]  %s821_s0, 128, %s18_s13, [#allocation3]  }
   0xd   :  { %s713_s19 = scalar_lea.vmem %s28_s15, 128  ;;  %p718_p6 = scmp.lt.s32.totalorder %s28_s15, %s28_s15 }
   0xe   :  { %p714_p5 = scmp.ne.s32.totalorder %s28_s15, %s713_s19  ;;  %p719_p7 = scmp.lt.s32.totalorder %s713_s19, %s713_s19 }
  0x10   :  { %p720_p8 = por %p719_p7, %p718_p6 }
  0x12   :  { %p721_p9 = pnand %p720_p8, %p714_p5 }
  0x14   :  { %724 = shalt.err (!%p721_p9)
}
  0x15   :  { %30 = dma.hbm_to_vmem [thread:$0]  %s822_s1, 128, %s28_s15, [#allocation6]  }
  0x16   :  { %745 = dma.done.wait [#allocation3], 128  }
  0x17   :  { %746 = vsyncadd [#allocation3], 4294967168 }
  0x18   :  { %747 = dma.done.wait [#allocation6], 128  }
  0x19   :  { %748 = vsyncadd [#allocation6], 4294967168  ;;  %v753_v0 = vmov 0.0   ;;  %vm754_vm0 = vmmov 0   ;;  %vm48_vm1 = vcmask 64512   ;;  %v40_v1 = vld [vmem:[#allocation5] sm:$0xff] }
  0x1a   :  { %636 = vmatprep.subr.mxu0 %v753_v0  ;;  %641 = vmatprep.subr.mxu1 %v753_v0  ;;  %v39_v2 = vld [vmem:[#allocation2] sm:$0xff]  ;;  %v83_v3 = vand.u32 4294901760, %v40_v1  ;;  %v755_v43 = vmov 683565275   ;;  %v756_v45 = vmov 2475754826  }
  0x1b   :  { %638 = vmatprep.mubr.msk.f32.mxu0 %vm754_vm0, %v753_v0  ;;  %643 = vmatprep.mubr.msk.f32.mxu1 %vm754_vm0, %v753_v0  ;;  %v50_v4 = vsel %vm48_vm1, %v39_v2, 0  ;;  %v619_v14 = vld [vmem:[%s823_s2] ss:$0 sm:$0xff]  ;;  %v757_v48 = vmov 2131351028   ;;  %s761_s2 = smov [#allocation7]  }
  0x1c   :  { %v118_v5 = vand.u32 4294901760, %v50_v4  ;;  %637 = vmatpush3.msra.mxu0 %v83_v3  ;;  %v160_v6 = vsub.f32 %v40_v1, %v83_v3  ;;  %v758_v51 = vmov 2102212464   ;;  %v759_v54 = vmov 920167782   ;;  %s609_s22 = sshll.u32 %s761_s2, 4  ;;  %s610_s22 = int_to_ptr.vmem [resolvable:$true] %s609_s22 }
  0x1d   :  { %646 = vmatprep.subr.mxu0 %v753_v0  ;;  %v760_v57 = vmov 1326507024   ;;  %s725_s23 = scalar_lea.vmem %s610_s22, 128  ;;  %p730_p11 = scmp.lt.s32.totalorder %s610_s22, %s610_s22 }
  0x1e   :  { %v119_v7 = vsub.f32 %v50_v4, %v118_v5  ;;  %v161_v8 = vand.u32 4294901760, %v160_v6  ;;  %p726_p10 = scmp.ne.s32.totalorder %s610_s22, %s725_s23  ;;  %p731_p12 = scmp.lt.s32.totalorder %s725_s23, %s725_s23 }
  0x20   :  { %v120_v9 = vand.u32 4294901760, %v119_v7  ;;  %v162_v10 = vsub.f32 %v160_v6, %v161_v8  ;;  %p732_p13 = por %p731_p12, %p730_p11 }
  0x22   :  { %v121_v11 = vsub.f32 %v119_v7, %v120_v9  ;;  %v163_v12 = vand.u32 4294901760, %v162_v10  ;;  %p733_p0 = pnand %p732_p13, %p726_p10 }
  0x24   :  { %v122_v13 = vand.u32 4294901760, %v121_v11  ;;  %642 = vmatpush3.msra.mxu1 %v163_v12 }
  0x25   :  { %644 = vmatmul.mubr.f32.vlgmr.msra.gmra.mxu1 %v118_v5  ;;  %651 = vmatprep.subr.mxu1 %v753_v0 }
  0x26   :  { %639 = vmatmul.mubr.f32.vlgmr.msra.gmra.mxu0 %v122_v13  ;;  %652 = vmatpush3.msra.mxu1 %v83_v3 }
  0x27   :  { %647 = vmatpush3.msra.mxu0 %v160_v6  ;;  %648 = vmatprep.mubr.msk.f32.mxu0 %vm754_vm0, %v753_v0 }
  0x28   :  { %653 = vmatprep.mubr.msk.f32.mxu1 %vm754_vm0, %v753_v0  ;;  %656 = vmatprep.subr.mxu0 %v753_v0 }
  0x29   :  { %654 = vmatmul.mubr.f32.vlgmr.msra.gmra.mxu1 %v120_v9  ;;  %661 = vmatprep.subr.mxu1 %v753_v0 }
  0x2a   :  { %649 = vmatmul.mubr.f32.vlgmr.msra.gmra.mxu0 %v119_v7  ;;  %662 = vmatpush3.msra.mxu1 %v83_v3 }
  0x2b   :  { %657 = vmatpush3.msra.mxu0 %v161_v8  ;;  %658 = vmatprep.mubr.msk.f32.mxu0 %vm754_vm0, %v753_v0 }
  0x2c   :  { %663 = vmatprep.mubr.msk.f32.mxu1 %vm754_vm0, %v753_v0 }
  0x2d   :  { %664 = vmatmul.mubr.f32.vlgmr.msra.gmra.mxu1 %v118_v5 }
  0x2e   :  { %659 = vmatmul.mubr.f32.vlgmr.msra.gmra.mxu0 %v118_v5 }
  0xe5   :  { %v200_v16 = vpop.f32.mrf.mxu1 }
  0xe6   :  { %v124_v15 = vpop.f32.mrf.mxu0 }
  0xe7   :  { %v125_v17 = vadd.f32 %v619_v14, %v124_v15  ;;  %v645_v19 = vpop.f32.mrf.mxu1 }
  0xe8   :  { %v640_v18 = vpop.f32.mrf.mxu0 }
  0xe9   :  { %v201_v20 = vadd.f32 %v200_v16, %v125_v17  ;;  %v348_v22 = vpop.f32.mrf.mxu1 }
  0xea   :  { %v274_v21 = vpop.f32.mrf.mxu0 }
  0xeb   :  { %v275_v23 = vadd.f32 %v274_v21, %v201_v20  ;;  %v655_v25 = vpop.f32.mrf.mxu1 }
  0xec   :  { %v650_v24 = vpop.f32.mrf.mxu0 }
  0xed   :  { %v349_v26 = vadd.f32 %v348_v22, %v275_v23  ;;  %v494_v28 = vpop.f32.mrf.mxu1 }
  0xee   :  { %v422_v27 = vpop.f32.mrf.mxu0 }
  0xef   :  { %v423_v29 = vadd.f32 %v422_v27, %v349_v26  ;;  %v665_v31 = vpop.f32.mrf.mxu1 }
  0xf0   :  { %v660_v30 = vpop.f32.mrf.mxu0 }
  0xf1   :  { %v797_v32 = vadd.f32 %v494_v28, %v423_v29 }
  0xf3   :  { %v501_v33 = vand.u32 2139095040, %v797_v32  ;;  %v498_v37 = vand.u32 2147483647, %v797_v32  ;;  %vm500_vm9 = vcmp.lt.s32.totalorder %v797_v32, 0  ;;  %vm590_vm14 = vweird.f32 %v797_v32 }
  0xf5   :  { %v502_v34 = vshrl.u32 %v501_v33, 23  ;;  %v505_v40 = vand.u32 8388607, %v498_v37  ;;  %vm499_vm10 = vcmp.le.f32.partialorder %v498_v37, 0.7853982 }
  0xf7   :  { %v620_v35 = vadd.s32 4294967169, %v502_v34  ;;  %v506_v59 = vor.u32 8388608, %v505_v40 }
  0xf9   :  { %v508_v36 = vadd.s32 1, %v620_v35  ;;  %v546_v9 = vshll.u32 %v506_v59, 8 }
  0xfb   :  { %vm509_vm2 = vcmp.gt.s32.totalorder %v508_v36, 0 }
  0xfc   :  { %v510_v38 = vsel %vm509_vm2, %v508_v36, 0 }
  0xfd   :  { %v512_v39 = vand.u32 31, %v510_v38  ;;  %v511_v42 = vshrl.u32 %v510_v38, 5 }
  0xff   :  { %v513_v41 = vsub.s32 32, %v512_v39  ;;  %v515_v44 = vshll.u32 %v755_v43, %v512_v39  ;;  %v518_v46 = vshll.u32 %v756_v45, %v512_v39  ;;  %v521_v50 = vshll.u32 %v757_v48, %v512_v39 }
 0x100   :  { %v524_v53 = vshll.u32 %v758_v51, %v512_v39  ;;  %v527_v56 = vshll.u32 %v759_v54, %v512_v39  ;;  %vm530_vm3 = vcmp.lt.s32.totalorder %v511_v42, 1  ;;  %vm533_vm4 = vcmp.lt.s32.totalorder %v511_v42, 4 }
 0x101   :  { %v516_v47 = vshrl.u32 %v756_v45, %v513_v41  ;;  %v519_v49 = vshrl.u32 %v757_v48, %v513_v41  ;;  %v522_v52 = vshrl.u32 %v758_v51, %v513_v41  ;;  %v525_v55 = vshrl.u32 %v759_v54, %v513_v41 }
 0x102   :  { %v528_v58 = vshrl.u32 %v760_v57, %v513_v41  ;;  %v514_v4 = vshrl.u32 %v755_v43, %v513_v41  ;;  %vm532_vm5 = vcmp.lt.s32.totalorder %v511_v42, 3  ;;  %vm531_vm6 = vcmp.lt.s32.totalorder %v511_v42, 2 }
 0x103   :  { %v517_v60 = vor.u32 %v516_v47, %v515_v44  ;;  %v520_v61 = vor.u32 %v519_v49, %v518_v46  ;;  %v523_v62 = vor.u32 %v522_v52, %v521_v50  ;;  %v526_v63 = vor.u32 %v525_v55, %v524_v53 }
 0x104   :  { %v529_v0 = vor.u32 %v528_v58, %v527_v56 }
 0x105   :  { %v535_v1 = vsel %vm533_vm4, %v523_v62, 2102212464  ;;  %v538_v2 = vsel %vm530_vm3, %v517_v60, %v520_v61  ;;  %v542_v3 = vsel %vm530_vm3, %v520_v61, %v523_v62  ;;  %v539_v5 = vsel %vm533_vm4, %v526_v63, 920167782 }
 0x106   :  { %v543_v6 = vsel %vm533_vm4, %v529_v0, 1326507024  ;;  %v540_v7 = vsel %vm532_vm5, %v523_v62, %v539_v5  ;;  %v534_v10 = vsel %vm530_vm3, %v514_v4, %v517_v60  ;;  %v536_v11 = vsel %vm532_vm5, %v520_v61, %v535_v1 }
 0x107   :  { %v544_v8 = vsel %vm532_vm5, %v526_v63, %v543_v6  ;;  %v541_v12 = vsel %vm531_vm6, %v538_v2, %v540_v7  ;;  %v537_v18 = vsel %vm531_vm6, %v534_v10, %v536_v11 }
 0x108   :  { %v545_v13 = vsel %vm531_vm6, %v542_v3, %v544_v8  ;;  %v806_v16 = vmul.u32.u64.low %v546_v9, %v541_v12  ;;  %v807_v17 = vmul.u32.u64.high %v546_v9, %v541_v12, %v806_v16  ;;  %v553_v20 = vmul.u32 %v546_v9, %v537_v18 }
 0x109   :  { %v803_v14 = vmul.u32.u64.low %v546_v9, %v545_v13  ;;  %v804_v15 = vmul.u32.u64.high %v546_v9, %v545_v13, %v803_v14 }
 0x10a   :  { %v556_v19 = vadd.s32 1, %v807_v17 }
 0x10b   :  { %vm555_vm7 = vc.u32 %v804_v15, %v806_v16  ;;  %v554_v33 = vadd.s32 %v806_v16, %v804_v15 }
 0x10c   :  { %v557_v21 = vsel %vm555_vm7, %v556_v19, %v807_v17 }
 0x10d   :  { %v558_v22 = vadd.s32 %v557_v21, %v553_v20 }
 0x10f   :  { %v559_v23 = vadd.s32 536870912, %v558_v22 }
 0x111   :  { %v560_v24 = vshrl.u32 %v559_v23, 30 }
 0x113   :  { %v561_v25 = vshll.u32 %v560_v24, 30  ;;  %v584_v47 = vsub.s32 4, %v560_v24 }
 0x115   :  { %v562_v26 = vsub.s32 %v558_v22, %v561_v25  ;;  %v585_v50 = vsel %vm500_vm9, %v584_v47, %v560_v24 }
 0x116   :  { %v587_v51 = vsel %vm499_vm10, 0, %v585_v50 }
 0x117   :  { %v564_v27 = vsub.s32 0, %v562_v26  ;;  %v591_v52 = vadd.s32 3, %v587_v51 }
 0x119   :  { %v621_v28 = vmin.u32 %v564_v27, %v562_v26  ;;  %v592_v53 = vand.u32 3, %v591_v52 }
 0x11b   :  { %v566_v29 = vclz %v621_v28  ;;  %vm597_vm11 = vcmp.eq.s32.totalorder %v592_v53, 2  ;;  %vm594_vm12 = vcmp.eq.s32.totalorder %v592_v53, 0  ;;  %vm593_vm13 = vcmp.lt.s32.totalorder %v592_v53, 2 }
 0x11d   :  { %v622_v30 = vadd.s32 4294967294, %v566_v29 }
 0x11f   :  { %vm623_vm8 = vcmp.lt.s32.totalorder %v622_v30, 0 }
 0x120   :  { %v569_v31 = vsel %vm623_vm8, 0, %v622_v30 }
 0x121   :  { %v570_v34 = vsub.s32 32, %v569_v31  ;;  %v574_v35 = vsub.s32 4294967266, %v569_v31  ;;  %v571_v36 = vshll.u32 %v562_v26, %v569_v31 }
 0x123   :  { %v572_v38 = vshrl.u32 %v554_v33, %v570_v34  ;;  %v575_v39 = vadd.s32 127, %v574_v35 }
 0x125   :  { %v573_v40 = vor.u32 %v572_v38, %v571_v36  ;;  %v576_v41 = vshll.u32 %v575_v39, 23 }
 0x127   :  { %v577_v42 = vor.u32 4788187, %v576_v41  ;;  %v580_v44 = vcvt.s32.f32 %v573_v40 }
 0x129   :  { %v578_v43 = vand.u32 2147483647, %v577_v42 }
 0x12b   :  { %v581_v45 = vmul.f32 %v580_v44, %v578_v43 }
 0x12d   :  { %v582_v46 = vxor.u32 2147483648, %v581_v45 }
 0x12f   :  { %v583_v48 = vsel %vm500_vm9, %v582_v46, %v581_v45 }
 0x130   :  { %v586_v49 = vsel %vm499_vm10, %v797_v32, %v583_v48 }
 0x131   :  { %681 = vcosq.f32 %v586_v49 }
 0x132   :  { %683 = vsinq.f32 %v586_v49 }
 0x13e   :  { %v682_v54 = vpop.eup %681 }
 0x13f   :  { %v684_v55 = vpop.eup %683  ;;  %v598_v56 = vxor.u32 2147483648, %v682_v54 }
 0x140   :  { %v595_v57 = vxor.u32 2147483648, %v684_v55 }
 0x141   :  { %v599_v58 = vsel %vm597_vm11, %v598_v56, %v684_v55 }
 0x142   :  { %v596_v59 = vsel %vm594_vm12, %v682_v54, %v595_v57 }
 0x143   :  { %v600_v37 = vsel %vm593_vm13, %v596_v59, %v599_v58 }
 0x144   :  { %v601_v60 = vsel %vm590_vm14, nan, %v600_v37 }
 0x145   :  { %602 = vst [vmem:[#allocation7] sm:$0xff] %v601_v60 }
 0x146   :  { %736 = shalt.err (!%p733_p0)
}
 0x147   :  { %612 = dma.vmem_to_hbm [thread:$0]  %s610_s22, 128, %s824_s3, [#allocation4]  }
 0x148   :  { %749 = dma.done.wait [#allocation4], 128  }
 0x149   :  { %750 = vsyncadd [#allocation4], 4294967168 }
 0x14a   :  { %616 = vsyncpa [#allocation3], 1 }
 0x14b   :  { %617 = vsyncpa [#allocation6], 1 }
 0x14c   :  { %618 = vsyncpa [#allocation4], 1 }

</bundles_post_ra>
